<compile_context>
chip_gen: v5e
topology: v5e:2x2
jax: 0.10.0
libtpu: 0.0.40
codegen_flags: <defaults>
</compile_context>

<pallas_src>
import functools

import jax
import jax.numpy as jnp
from jax.experimental import pallas as pl
from jax.experimental.pallas import tpu as pltpu


def _combined_loss_kernel(x_ref, t_ref, out_ref,
                          ep_acc, oh_acc, in_acc, ce_acc,
                          *, total_pixels, num_classes, weight, eps):
    n = pl.program_id(0)
    j = pl.program_id(1)
    is_first = jnp.logical_and(n == 0, j == 0)
    is_last = jnp.logical_and(n == pl.num_programs(0) - 1,
                              j == pl.num_programs(1) - 1)

    @pl.when(is_first)
    def _():
        ep_acc[...] = jnp.zeros_like(ep_acc)
        oh_acc[...] = jnp.zeros_like(oh_acc)
        in_acc[...] = jnp.zeros_like(in_acc)
        ce_acc[...] = jnp.zeros_like(ce_acc)

    # x: (C, T) logits — classes on sublanes, pixels on lanes (lane-dense).
    x = x_ref[0].astype(jnp.float32)
    # t: (1, T) int32 targets — lane-dense.
    t = t_ref[0]

    # softmax over the class (sublane) axis == F.softmax(input, dim=1)
    m = jnp.max(x, axis=0, keepdims=True)              # (1, T)
    e = jnp.exp(x - m)                                  # (C, T)
    s = jnp.sum(e, axis=0, keepdims=True)               # (1, T)
    p = e * pl.reciprocal(s, approx=True)               # softmax (EUP recip)
    ep = jnp.exp(p)                                      # DiceLoss does output.exp()

    cls = jax.lax.broadcasted_iota(jnp.int32, x.shape, 0)   # (C, T) class ids
    onehot = (cls == t).astype(jnp.float32)                  # scatter_(1, target, 1)

    # cross-entropy per pixel: logsumexp(x) - x[target]   (uses exact log(s))
    lse = jnp.log(s) + m                                 # (1, T)
    x_t = jnp.sum(x * onehot, axis=0, keepdims=True)     # (1, T)
    ce = lse - x_t                                       # (1, T)

    # per-class lane reductions -> (C, 1); accumulate directly (no concat)
    ep_acc[...] += jnp.sum(ep, axis=1, keepdims=True)
    oh_acc[...] += jnp.sum(onehot, axis=1, keepdims=True)
    in_acc[...] += jnp.sum(ep * onehot, axis=1, keepdims=True)
    ce_acc[...] += jnp.sum(ce, axis=1, keepdims=True)

    @pl.when(is_last)
    def _():
        numerator = 2.0 * in_acc[...]                    # (C, 1)
        denominator = ep_acc[...] + oh_acc[...] + eps    # (C, 1)
        dice = jnp.sum(1.0 - numerator / denominator) / num_classes
        ce_mean = ce_acc[0, 0] / total_pixels
        out_ref[0, 0] = ce_mean * weight + dice


def _pick_tile_cols(hw, max_tile):
    """Largest lane-friendly tile along the pixel axis that divides H*W."""
    if hw <= max_tile:
        return hw
    # prefer divisors of hw that are multiples of 128 (keeps (8,128) rule happy)
    t = (max_tile // 128) * 128
    while t >= 128:
        if hw % t == 0:
            return t
        t -= 128
    # fallback: full row (always legal; only used for awkward H*W)
    return hw


def combined_loss_adv(logits_nchw, target_nhw, dice_c, weight=1.0,
                      max_tile_cols=8192):
    """Pallas equivalent of CombinedLoss_adv.forward(input, target, dice_c, weight)."""
    N, C, H, W = logits_nchw.shape
    HW = H * W
    P = N * HW

    # Free view reshapes only — no HBM transpose pass.
    x = logits_nchw.reshape(N, C, HW)                 # classes on sublanes
    t = target_nhw.astype(jnp.int32).reshape(N, 1, HW)  # lane-dense targets

    tile_cols = _pick_tile_cols(HW, max_tile_cols)
    num_j = HW // tile_cols

    kernel = functools.partial(
        _combined_loss_kernel,
        total_pixels=float(P),
        num_classes=C,
        weight=float(weight),
        eps=1e-4,
    )

    # TODO(synk): on v7x, shard the pixel axis across the 2 TensorCores with
    # per-core partial sums reduced in the wrapper for ~2x on that chip.
    out = pl.pallas_call(
        kernel,
        out_shape=jax.ShapeDtypeStruct((1, 1), jnp.float32),
        grid_spec=pltpu.PrefetchScalarGridSpec(
            num_scalar_prefetch=0,
            grid=(N, num_j),
            in_specs=[
                pl.BlockSpec((1, C, tile_cols), lambda n, j: (n, 0, j)),
                pl.BlockSpec((1, 1, tile_cols), lambda n, j: (n, 0, j)),
            ],
            out_specs=pl.BlockSpec(memory_space=pltpu.MemorySpace.SMEM),
            scratch_shapes=[
                pltpu.VMEM((C, 1), jnp.float32),   # sum exp(softmax) per class
                pltpu.VMEM((C, 1), jnp.float32),   # one-hot counts per class
                pltpu.VMEM((C, 1), jnp.float32),   # intersection per class
                pltpu.VMEM((1, 1), jnp.float32),   # cross-entropy sum
            ],
        ),
        compiler_params=pltpu.CompilerParams(
            dimension_semantics=("arbitrary", "arbitrary")),
    )(x, t)

    # trivial scalar add done outside the kernel
    return out[0, 0] + jnp.asarray(dice_c, jnp.float32)


def _ref_combined_loss(x_nchw, t_nhw, dice_c, weight=1.0):
    """Pure-JAX reference mirroring the PyTorch module semantics."""
    C = x_nchw.shape[1]
    p = jax.nn.softmax(x_nchw, axis=1)
    ep = jnp.exp(p)                                   # DiceLoss: output.exp()
    onehot = jax.nn.one_hot(t_nhw, C, axis=1, dtype=jnp.float32)  # N,C,H,W
    numerator = 2.0 * jnp.sum(ep * onehot, axis=(0, 2, 3))
    denominator = jnp.sum(ep + onehot, axis=(0, 2, 3)) + 1e-4
    dice = jnp.sum(1.0 - numerator / denominator) / C
    logp = jax.nn.log_softmax(x_nchw, axis=1)
    ce = -jnp.mean(jnp.sum(logp * onehot, axis=1))
    return ce * weight + dice + jnp.asarray(dice_c, jnp.float32)


if __name__ == "__main__":
    key = jax.random.PRNGKey(0)
    k1, k2 = jax.random.split(key)

    N, C, H, W = 2, 4, 16, 16
    logits = jax.random.normal(k1, (N, C, H, W), dtype=jnp.float32)
    target = jax.random.randint(k2, (N, H, W), 0, C, dtype=jnp.int32)
    dice_c = jnp.float32(0.25)
    weight = 1.0

    y = combined_loss_adv(logits, target, dice_c, weight=weight)
    y = jax.block_until_ready(y)

    y_ref = _ref_combined_loss(logits, target, dice_c, weight=weight)
    assert jnp.allclose(y, y_ref, rtol=2e-3, atol=2e-3), (y, y_ref)

    print("KERNEL_OK")
</pallas_src>

<mosaic_0001>
module attributes {stable_mosaic.version = 11 : i64} {
  func.func @_combined_loss_kernel(%arg0: i32, %arg1: i32, %arg2: memref<1x4x256xf32, #tpu.memory_space<vmem>>, %arg3: memref<1x1x256xi32, #tpu.memory_space<vmem>>, %arg4: memref<1x1xf32, #tpu.memory_space<smem>>, %arg5: memref<4x1xf32, #tpu.memory_space<vmem>>, %arg6: memref<4x1xf32, #tpu.memory_space<vmem>>, %arg7: memref<4x1xf32, #tpu.memory_space<vmem>>, %arg8: memref<1x1xf32, #tpu.memory_space<vmem>>) attributes {dimension_semantics = [#tpu.dimension_semantics<arbitrary>, #tpu.dimension_semantics<arbitrary>], iteration_bounds = array<i64: 2, 1>, scalar_prefetch = 0 : i64, scratch_operands = 4 : i64, tpu.core_type = #tpu.core_type<tc>, window_params = [{transform_indices = @transform_0, window_bounds = array<i64: 1, 4, 256>}, {transform_indices = @transform_1, window_bounds = array<i64: 1, 1, 256>}, {transform_indices = @transform_2, window_bounds = array<i64: 1, 1>}]} {
    %c0_i32 = arith.constant 0 : i32
    %0 = arith.cmpi eq, %arg0, %c0_i32 : i32
    %c0_i32_0 = arith.constant 0 : i32
    %1 = arith.cmpi eq, %arg1, %c0_i32_0 : i32
    %2 = arith.andi %0, %1 : i1
    %c1_i32 = arith.constant 1 : i32
    %3 = arith.cmpi eq, %arg0, %c1_i32 : i32
    %c0_i32_1 = arith.constant 0 : i32
    %4 = arith.cmpi eq, %arg1, %c0_i32_1 : i32
    %5 = arith.andi %3, %4 : i1
    %6 = arith.extui %2 : i1 to i32
    %c0_i32_2 = arith.constant 0 : i32
    %7 = arith.cmpi ne, %6, %c0_i32_2 : i32
    scf.if %7 {
      %cst_31 = arith.constant 0.000000e+00 : f32
      %57 = vector.broadcast %cst_31 : f32 to vector<4x1xf32>
      %c0_32 = arith.constant 0 : index
      %c0_33 = arith.constant 0 : index
      %58 = vector.load %arg5[%c0_32, %c0_33] : memref<4x1xf32, #tpu.memory_space<vmem>>, vector<4x1xf32>
      tpu.vector_store %arg5[%c0_32, %c0_33], %57 {strides = array<i32>} : memref<4x1xf32, #tpu.memory_space<vmem>>, vector<4x1xf32>,
      %cst_34 = arith.constant 0.000000e+00 : f32
      %59 = vector.broadcast %cst_34 : f32 to vector<4x1xf32>
      %c0_35 = arith.constant 0 : index
      %c0_36 = arith.constant 0 : index
      %60 = vector.load %arg6[%c0_35, %c0_36] : memref<4x1xf32, #tpu.memory_space<vmem>>, vector<4x1xf32>
      tpu.vector_store %arg6[%c0_35, %c0_36], %59 {strides = array<i32>} : memref<4x1xf32, #tpu.memory_space<vmem>>, vector<4x1xf32>,
      %cst_37 = arith.constant 0.000000e+00 : f32
      %61 = vector.broadcast %cst_37 : f32 to vector<4x1xf32>
      %c0_38 = arith.constant 0 : index
      %c0_39 = arith.constant 0 : index
      %62 = vector.load %arg7[%c0_38, %c0_39] : memref<4x1xf32, #tpu.memory_space<vmem>>, vector<4x1xf32>
      tpu.vector_store %arg7[%c0_38, %c0_39], %61 {strides = array<i32>} : memref<4x1xf32, #tpu.memory_space<vmem>>, vector<4x1xf32>,
      %cst_40 = arith.constant 0.000000e+00 : f32
      %63 = vector.broadcast %cst_40 : f32 to vector<1x1xf32>
      %c0_41 = arith.constant 0 : index
      %c0_42 = arith.constant 0 : index
      %64 = vector.load %arg8[%c0_41, %c0_42] : memref<1x1xf32, #tpu.memory_space<vmem>>, vector<1x1xf32>
      tpu.vector_store %arg8[%c0_41, %c0_42], %63 {strides = array<i32>} : memref<1x1xf32, #tpu.memory_space<vmem>>, vector<1x1xf32>,
    } else {
    }
    %c0 = arith.constant 0 : index
    %c0_3 = arith.constant 0 : index
    %c0_4 = arith.constant 0 : index
    %8 = vector.load %arg2[%c0, %c0_3, %c0_4] : memref<1x4x256xf32, #tpu.memory_space<vmem>>, vector<1x4x256xf32>
    %9 = vector.shape_cast %8 : vector<1x4x256xf32> to vector<4x256xf32>
    %c0_5 = arith.constant 0 : index
    %c0_6 = arith.constant 0 : index
    %c0_7 = arith.constant 0 : index
    %10 = vector.load %arg3[%c0_5, %c0_6, %c0_7] : memref<1x1x256xi32, #tpu.memory_space<vmem>>, vector<1x1x256xi32>
    %11 = vector.shape_cast %10 : vector<1x1x256xi32> to vector<1x256xi32>
    %cst = arith.constant dense<0xFF800000> : vector<256xf32>
    %12 = vector.multi_reduction <maximumf>, %9, %cst [0] : vector<4x256xf32> to vector<256xf32>
    %13 = vector.shape_cast %12 : vector<256xf32> to vector<1x256xf32>
    %14 = vector.broadcast %13 : vector<1x256xf32> to vector<4x256xf32>
    %15 = arith.subf %9, %14 : vector<4x256xf32>
    %16 = math.exp %15 : vector<4x256xf32>
    %cst_8 = arith.constant dense<0.000000e+00> : vector<256xf32>
    %17 = vector.multi_reduction <add>, %16, %cst_8 [0] : vector<4x256xf32> to vector<256xf32>
    %18 = vector.shape_cast %17 : vector<256xf32> to vector<1x256xf32>
    %19 = tpu.reciprocal %18 {approx = true} : vector<1x256xf32> -> vector<1x256xf32>
    %20 = vector.broadcast %19 : vector<1x256xf32> to vector<4x256xf32>
    %21 = arith.mulf %16, %20 : vector<4x256xf32>
    %22 = math.exp %21 : vector<4x256xf32>
    %23 = tpu.iota {dimensions = array<i32: 0>} : vector<4x256xi32>
    %24 = vector.broadcast %11 : vector<1x256xi32> to vector<4x256xi32>
    %25 = arith.cmpi eq, %23, %24 : vector<4x256xi32>
    %26 = arith.extui %25 : vector<4x256xi1> to vector<4x256xi32>
    %27 = arith.sitofp %26 : vector<4x256xi32> to vector<4x256xf32>
    %28 = math.log %18 : vector<1x256xf32>
    %29 = arith.addf %28, %13 : vector<1x256xf32>
    %30 = arith.mulf %9, %27 : vector<4x256xf32>
    %cst_9 = arith.constant dense<0.000000e+00> : vector<256xf32>
    %31 = vector.multi_reduction <add>, %30, %cst_9 [0] : vector<4x256xf32> to vector<256xf32>
    %32 = vector.shape_cast %31 : vector<256xf32> to vector<1x256xf32>
    %33 = arith.subf %29, %32 : vector<1x256xf32>
    %c0_10 = arith.constant 0 : index
    %c0_11 = arith.constant 0 : index
    %34 = vector.load %arg5[%c0_10, %c0_11] : memref<4x1xf32, #tpu.memory_space<vmem>>, vector<4x1xf32>
    %cst_12 = arith.constant dense<0.000000e+00> : vector<4xf32>
    %35 = vector.multi_reduction <add>, %22, %cst_12 [1] : vector<4x256xf32> to vector<4xf32>
    %36 = vector.shape_cast %35 : vector<4xf32> to vector<4x1xf32>
    %37 = arith.addf %34, %36 : vector<4x1xf32>
    %c0_13 = arith.constant 0 : index
    %c0_14 = arith.constant 0 : index
    %38 = vector.load %arg5[%c0_13, %c0_14] : memref<4x1xf32, #tpu.memory_space<vmem>>, vector<4x1xf32>
    tpu.vector_store %arg5[%c0_13, %c0_14], %37 {strides = array<i32>} : memref<4x1xf32, #tpu.memory_space<vmem>>, vector<4x1xf32>,
    %c0_15 = arith.constant 0 : index
    %c0_16 = arith.constant 0 : index
    %39 = vector.load %arg6[%c0_15, %c0_16] : memref<4x1xf32, #tpu.memory_space<vmem>>, vector<4x1xf32>
    %cst_17 = arith.constant dense<0.000000e+00> : vector<4xf32>
    %40 = vector.multi_reduction <add>, %27, %cst_17 [1] : vector<4x256xf32> to vector<4xf32>
    %41 = vector.shape_cast %40 : vector<4xf32> to vector<4x1xf32>
    %42 = arith.addf %39, %41 : vector<4x1xf32>
    %c0_18 = arith.constant 0 : index
    %c0_19 = arith.constant 0 : index
    %43 = vector.load %arg6[%c0_18, %c0_19] : memref<4x1xf32, #tpu.memory_space<vmem>>, vector<4x1xf32>
    tpu.vector_store %arg6[%c0_18, %c0_19], %42 {strides = array<i32>} : memref<4x1xf32, #tpu.memory_space<vmem>>, vector<4x1xf32>,
    %c0_20 = arith.constant 0 : index
    %c0_21 = arith.constant 0 : index
    %44 = vector.load %arg7[%c0_20, %c0_21] : memref<4x1xf32, #tpu.memory_space<vmem>>, vector<4x1xf32>
    %45 = arith.mulf %22, %27 : vector<4x256xf32>
    %cst_22 = arith.constant dense<0.000000e+00> : vector<4xf32>
    %46 = vector.multi_reduction <add>, %45, %cst_22 [1] : vector<4x256xf32> to vector<4xf32>
    %47 = vector.shape_cast %46 : vector<4xf32> to vector<4x1xf32>
    %48 = arith.addf %44, %47 : vector<4x1xf32>
    %c0_23 = arith.constant 0 : index
    %c0_24 = arith.constant 0 : index
    %49 = vector.load %arg7[%c0_23, %c0_24] : memref<4x1xf32, #tpu.memory_space<vmem>>, vector<4x1xf32>
    tpu.vector_store %arg7[%c0_23, %c0_24], %48 {strides = array<i32>} : memref<4x1xf32, #tpu.memory_space<vmem>>, vector<4x1xf32>,
    %c0_25 = arith.constant 0 : index
    %c0_26 = arith.constant 0 : index
    %50 = vector.load %arg8[%c0_25, %c0_26] : memref<1x1xf32, #tpu.memory_space<vmem>>, vector<1x1xf32>
    %cst_27 = arith.constant dense<0.000000e+00> : vector<1xf32>
    %51 = vector.multi_reduction <add>, %33, %cst_27 [1] : vector<1x256xf32> to vector<1xf32>
    %52 = vector.shape_cast %51 : vector<1xf32> to vector<1x1xf32>
    %53 = arith.addf %50, %52 : vector<1x1xf32>
    %c0_28 = arith.constant 0 : index
    %c0_29 = arith.constant 0 : index
    %54 = vector.load %arg8[%c0_28, %c0_29] : memref<1x1xf32, #tpu.memory_space<vmem>>, vector<1x1xf32>
    tpu.vector_store %arg8[%c0_28, %c0_29], %53 {strides = array<i32>} : memref<1x1xf32, #tpu.memory_space<vmem>>, vector<1x1xf32>,
    %55 = arith.extui %5 : i1 to i32
    %c0_i32_30 = arith.constant 0 : i32
    %56 = arith.cmpi ne, %55, %c0_i32_30 : i32
    scf.if %56 {
      %c0_31 = arith.constant 0 : index
      %c0_32 = arith.constant 0 : index
      %57 = vector.load %arg7[%c0_31, %c0_32] : memref<4x1xf32, #tpu.memory_space<vmem>>, vector<4x1xf32>
      %cst_33 = arith.constant 2.000000e+00 : f32
      %58 = vector.broadcast %cst_33 : f32 to vector<4x1xf32>
      %59 = arith.mulf %58, %57 : vector<4x1xf32>
      %c0_34 = arith.constant 0 : index
      %c0_35 = arith.constant 0 : index
      %60 = vector.load %arg5[%c0_34, %c0_35] : memref<4x1xf32, #tpu.memory_space<vmem>>, vector<4x1xf32>
      %c0_36 = arith.constant 0 : index
      %c0_37 = arith.constant 0 : index
      %61 = vector.load %arg6[%c0_36, %c0_37] : memref<4x1xf32, #tpu.memory_space<vmem>>, vector<4x1xf32>
      %62 = arith.addf %60, %61 : vector<4x1xf32>
      %cst_38 = arith.constant 9.99999974E-5 : f32
      %63 = vector.broadcast %cst_38 : f32 to vector<4x1xf32>
      %64 = arith.addf %62, %63 : vector<4x1xf32>
      %65 = arith.divf %59, %64 : vector<4x1xf32>
      %cst_39 = arith.constant 1.000000e+00 : f32
      %66 = vector.broadcast %cst_39 : f32 to vector<4x1xf32>
      %67 = arith.subf %66, %65 : vector<4x1xf32>
      %68 = vector.shape_cast %67 : vector<4x1xf32> to vector<1x4x1xf32>
      %cst_40 = arith.constant dense<0.000000e+00> : vector<1xf32>
      %69 = vector.multi_reduction <add>, %68, %cst_40 [1, 2] : vector<1x4x1xf32> to vector<1xf32>
      %70 = vector.shape_cast %69 : vector<1xf32> to vector<1x1x1xf32>
      %71 = vector.extract %70[0, 0, 0] : f32 from vector<1x1x1xf32>
      %cst_41 = arith.constant 4.000000e+00 : f32
      %72 = arith.divf %71, %cst_41 : f32
      %c0_42 = arith.constant 0 : index
      %c0_43 = arith.constant 0 : index
      %73 = vector.load %arg8[%c0_42, %c0_43] : memref<1x1xf32, #tpu.memory_space<vmem>>, vector<1x1xf32>
      %74 = vector.extract %73[0, 0] : f32 from vector<1x1xf32>
      %cst_44 = arith.constant 5.120000e+02 : f32
      %75 = arith.divf %74, %cst_44 : f32
      %cst_45 = arith.constant 1.000000e+00 : f32
      %76 = arith.mulf %75, %cst_45 : f32
      %77 = arith.addf %76, %72 : f32
      %c0_46 = arith.constant 0 : index
      %c0_47 = arith.constant 0 : index
      %78 = memref.load %arg4[%c0_46, %c0_47] : memref<1x1xf32, #tpu.memory_space<smem>>
      memref.store %77, %arg4[%c0_46, %c0_47] : memref<1x1xf32, #tpu.memory_space<smem>>
    } else {
    }
    return
  }
  func.func @transform_0(%arg0: i32, %arg1: i32) -> (i32, i32, i32) {
    %c0_i32 = arith.constant 0 : i32
    %c0_i32_0 = arith.constant 0 : i32
    return %arg0, %c0_i32, %arg1 : i32, i32, i32
  }
  func.func @transform_1(%arg0: i32, %arg1: i32) -> (i32, i32, i32) {
    %c0_i32 = arith.constant 0 : i32
    %c0_i32_0 = arith.constant 0 : i32
    return %arg0, %c0_i32, %arg1 : i32, i32, i32
  }
  func.func @transform_2(%arg0: i32, %arg1: i32) -> (i32, i32) {
    %c0_i32 = arith.constant 0 : i32
    %c0_i32_0 = arith.constant 0 : i32
    %c0_i32_1 = arith.constant 0 : i32
    return %c0_i32, %c0_i32_0 : i32, i32
  }
}

</mosaic_0001>

<bundles_post_ra>
// kernel: tpu_custom_call.1
= control target key start
LH: loop header
LB: loop body
LE: loop exit
PB: predicated region body
PF: predicated region fallthrough
CT: control target
= control target key end

     0   :  { %7 = vsyncpa [#allocation7], 0  ;;  %s949_s0 = inlined_call_operand.hbm [shape: f32[2,4,256], index: 0, kind: input, shape index: {}]   ;;  %s950_s1 = inlined_call_operand.hbm [shape: s32[2,1,256], index: 1, kind: input, shape index: {}]   ;;  %s951_s2 = inlined_call_operand.hbm [shape: f32[1,1], index: 2, kind: output, shape index: {}]  }
   0x1   :  { %9 = vsyncpa [#allocation7 + $0x1], 0 }
   0x2   :  { %10 = vsyncpa [#allocation10], 0 }
   0x3   :  { %12 = vsyncpa [#allocation10 + $0x1], 0 }
   0x4   :  { %13 = vsyncpa [#allocation8], 0  ;;  %s801_s9 = smov 0   ;;  %s803_s10 = smov 0  }
   0x5   :  { %s805_s11 = smov 0   ;;  %s807_s12 = smov 0  }
   0x6   :  { %s809_s13 = smov 0   ;;  %s811_s14 = smov 0  }
   0x7 LB: > { %s528_s15 = sadd.s32 4294967295, %s779_s14   ;;  %s31_s16 = sadd.s32 1, %s775_s13  ;;  %s779_s14 = sphi %s811_s14, %s19_s14   ;;  %s775_s13 = sphi %s809_s13, %s959_s13   ;;  %s771_s12 = sphi %s807_s12, %s958_s12   ;;  %s767_s11 = sphi %s805_s11, %s957_s11   ;;  %s763_s10 = sphi %s803_s10, %s956_s10   ;;  %s759_s9 = sphi %s801_s9, %s955_s9  }
   0x8   : > { %p33_p0 = scmp.ge.s32.totalorder %s31_s16, 2  ;;  %s40_s17 = sadd.s32 1, %s767_s11 }
   0x9   : > { %p47_p1 = scmp.ne.s32.totalorder %s767_s11, %s763_s10  ;;  %p48_p2 = scmp.eq.s32.totalorder %s779_s14, 0 }
   0xa   : > { %s961_s16 = smov (%p33_p0, %s31_s16), 0  ;;  %p53_p4 = scmp.ne.s32.totalorder %s763_s10, %s759_s9 }
   0xb   : > { %p837_p3 = por %p48_p2, %p47_p1  ;;  %s35_s19 = ssub.s32 %s775_s13, %s961_s16 }
   0xc   : > { %p54_p5 = scmp.eq.s32.totalorder %s528_s15, 0  ;;  %p38_p6 = scmp.eq.s32.totalorder %s35_s19, 0 }
   0xd   : > { %p573_p8 = scmp.lt.s32.totalorder %s779_s14, 2  ;;  %s126_s22 = sand.u32 1, %s767_s11  }
   0xe   : > { %p846_p7 = por %p54_p5, %p53_p4  ;;  %s547_s23 = sshll.u32 %s775_s13, 3 }
   0xf   : > { %s852_s21 = scalar_select %p38_p6, %s767_s11, %s40_s17  }
  0x10   : > { %s531_s24 = sshll.u32 %s126_s22, 3  ;;  %s137_s27 = scalar_lea.hbm %s949_s0, %s547_s23 }
  0x11   : > { %s139_s28 = sshll.u32 %s137_s27, 4  ;;  %s130_s29 = scalar_lea.vmem [#allocation6], %s531_s24  ;;  %s140_s28 = int_to_ptr.hbm [resolvable:$true] %s139_s28 }
  0x12   : > { %s141_s30 = sshll.u32 %s130_s29, 4  ;;  %p861_p9 = pnand %p573_p8, %p837_p3  ;;  %s142_s30 = int_to_ptr.vmem [resolvable:$true] %s141_s30 }
  0x13   : > { %p536_p10 = scmp.ge.s32.totalorder %s779_s14, 1  ;;  %p167_p11 = scmp.lt.s32.totalorder %s779_s14, 3 }
  0x14   : > { %s534_s4 = sshll.u32 %s126_s22, 1  ;;  %s127_s5 = scalar_lea.sflag [#allocation7], %s126_s22 }
  0x15   : > { %569 = dma.hbm_to_vmem [thread:$0]  (!%p861_p9), %s140_s28, 128, %s142_s30, %s127_s5  }
  0x16   : > { %p168_p12 = pnand %p536_p10, %p167_p11  ;;  %s535_s6 = sshll.u32 %s775_s13, 1 }
  0x17   : > { %s152_s7 = scalar_lea.vmem [#allocation9], %s534_s4  ;;  %s158_s18 = scalar_lea.hbm %s950_s1, %s535_s6 }
  0x18   : > { %s162_s8 = sshll.u32 %s152_s7, 4  ;;  %s160_s19 = sshll.u32 %s158_s18, 4  ;;  %s163_s8 = int_to_ptr.vmem [resolvable:$true] %s162_s8  ;;  %s161_s19 = int_to_ptr.hbm [resolvable:$true] %s160_s19 }
  0x19   : > { %s149_s23 = scalar_lea.sflag [#allocation10], %s126_s22  ;;  %171 = sbr.rel (%p168_p12) target bundleno = 484 (0x1e4), region = 28 }
  0x1a   : > { %572 = dma.hbm_to_vmem [thread:$0]  (!%p861_p9), %s161_s19, 32, %s163_s8, %s149_s23  }
  0x1b   : > { %s173_s24 = sand.u32 (!%p168_p12), 1, %s763_s10  }
  0x1c   : > { %s537_s25 = sshll.u32 (!%p168_p12), %s173_s24, 3  ;;  %s174_s26 = scalar_lea.sflag (!%p168_p12), [#allocation7], %s173_s24 }
  0x1d   : > { %s177_s27 = scalar_lea.vmem (!%p168_p12), [#allocation6], %s537_s25 }
  0x1e   : > { %746 = dma.done.wait (%p846_p7), %s174_s26, 128  }
  0x1f   : > { %748 = vsyncadd (%p846_p7), %s174_s26, 4294967168  ;;  %s538_s28 = sshll.u32 %s173_s24, 1  ;;  %s184_s29 = scalar_lea.sflag [#allocation10], %s173_s24 }
  0x20   : > { %s880_s30 = scalar_lea.vmem [#allocation9], %s538_s28 }
  0x21   : > { %750 = dma.done.wait (%p846_p7), %s184_s29, 32  }
  0x22   : > { %752 = vsyncadd (%p846_p7), %s184_s29, 4294967264  ;;  %p211_p13 = scmp.eq.s32.totalorder %s771_s12, 0  ;;  %p215_p0 = scmp.eq.s32.totalorder %s771_s12, 1 }
  0x23   : > { %vm220_vm0 = vcmask (%p211_p13), 3072   ;;  %v781_v0 = vmov (%p211_p13), 0.0   ;;  %vm224_vm1 = vcmask (%p211_p13), 0  }
  0x24   : > { %219 = sbr.rel (!%p211_p13) target bundleno = 41 (0x29), region = 40  ;;  %221 = vst.msk [vmem:[#allocation2] sm:$0xf] (%p211_p13), %vm220_vm0, %v781_v0 }
  0x25   : > { %222 = vst.msk [vmem:[#allocation3] sm:$0xf] (%p211_p13), %vm220_vm0, %v781_v0 }
  0x26   : > { %223 = vst.msk [vmem:[#allocation4] sm:$0xf] (%p211_p13), %vm220_vm0, %v781_v0 }
  0x27   : > { %225 = vst.msk [vmem:[#allocation5] sm:$0x1] (%p211_p13), %vm224_vm1, %v781_v0 }
  0x29 PF: > { %v226_v1 = vld [vmem:[%s177_s27] sm:$0xff]  ;;  %vm234_vm2 = vcmask 1043456   ;;  %v227_v21 = vld [vmem:[%s880_s30] sm:$0x3]  ;;  %v287_v23 = vlaneseq  ;;  %v782_v27 = vmov 0.0   ;;  %vm344_vm5 = vcmask 3072  }
  0x2a   : > { %229 = vst [vmem:[#allocation1] ss:$2 sm:$0xff] %v226_v1  ;;  %v290_v25 = vperm.slane %v227_v21, 1  ;;  %v289_v26 = vperm.slane %v227_v21, 0  ;;  %vm374_vm6 = vcmask 0  }
  0x2b   : > { %v288_v24 = vshrl.u32 %v287_v23, 7 }
  0x2d   : > { %vm292_vm3 = vcmp.eq.s32.totalorder %v288_v24, %v290_v25  ;;  %vm291_vm4 = vcmp.eq.s32.totalorder %v288_v24, %v289_v26 }
  0x2e   : > { %v898_v28 = vsel %vm292_vm3, 1.0, %v782_v27  ;;  %v901_v31 = vsel %vm291_vm4, 1.0, %v782_v27 }
  0x2f   : > { %v305_v29 = vrot.slane %v898_v28, 4  ;;  %v348_v25 = vsel %vm234_vm2, %v898_v28, 0.0 }
  0x31   : > { %v230_v2 = vld.sshfl [vmem:[#allocation1] sm:$0xff pattern:$0x75316420]  ;;  %v231_v3 = vld.sshfl [vmem:[#allocation1 + $0x8] sm:$0xff pattern:$0x75316420]  ;;  %v306_v32 = vsel %vm234_vm2, %v901_v31, %v305_v29 }
  0x32   : > { %v235_v4 = vsel %vm234_vm2, %v230_v2, -inf  ;;  %v242_v5 = vsel %vm234_vm2, %v231_v3, -inf  ;;  %v308_v33 = vmul.f32 %v306_v32, %v226_v1 }
  0x33   : > { %v236_v6 = vrot.slane %v235_v4, 4  ;;  %v243_v7 = vrot.slane %v242_v5, 4 }
  0x35   : > { %v237_v8 = vmax.f32 %v235_v4, %v236_v6  ;;  %v244_v9 = vmax.f32 %v242_v5, %v243_v7 }
  0x37   : > { %v238_v10 = vrot.slane %v237_v8, 2  ;;  %v245_v11 = vrot.slane %v244_v9, 2 }
  0x39   : > { %v239_v12 = vmax.f32 %v237_v8, %v238_v10  ;;  %v246_v13 = vmax.f32 %v244_v9, %v245_v11 }
  0x3b   : > { %v240_v14 = vrot.slane %v239_v12, 1  ;;  %v247_v15 = vrot.slane %v246_v13, 1 }
  0x3d   : > { %v890_v16 = vmax.f32 %v239_v12, %v240_v14  ;;  %v892_v17 = vmax.f32 %v246_v13, %v247_v15 }
  0x3f   : > { %v251_v18 = vrot.slane %v892_v17, 4 }
  0x41   : > { %v252_v19 = vsel %vm234_vm2, %v890_v16, %v251_v18 }
  0x42   : > { %v254_v20 = vsub.f32 %v226_v1, %v252_v19 }
  0x44   : > { %v255_v22 = vmul.f32 1.442695, %v254_v20 }
  0x46   : > { %629 = vpow2.f32 %v255_v22 }
  0x4c   : > { %v630_v30 = vpop.eup %629 }
  0x4d   : > { %258 = vst [vmem:[#allocation1] ss:$2 sm:$0xff] %v630_v30 }
  0x54   : > { %v259_v34 = vld.sshfl [vmem:[#allocation1] sm:$0xff pattern:$0x75316420]  ;;  %v260_v35 = vld.sshfl [vmem:[#allocation1 + $0x8] sm:$0xff pattern:$0x75316420] }
  0x55   : > { %v263_v36 = vsel %vm234_vm2, %v259_v34, 0.0  ;;  %v270_v37 = vsel %vm234_vm2, %v260_v35, 0.0  ;;  %310 = vst [vmem:[#allocation1] ss:$2 sm:$0xff] %v308_v33  ;;  %v331_v34 = vld [vmem:[#allocation2] sm:$0xf] }
  0x56   : > { %v264_v38 = vrot.slane %v263_v36, 4  ;;  %v271_v39 = vrot.slane %v270_v37, 4 }
  0x58   : > { %v265_v40 = vadd.f32 %v264_v38, %v263_v36  ;;  %v272_v41 = vadd.f32 %v271_v39, %v270_v37  ;;  %v346_v37 = vld [vmem:[#allocation3] sm:$0xf] }
  0x5a   : > { %v266_v42 = vrot.slane %v265_v40, 2  ;;  %v273_v43 = vrot.slane %v272_v41, 2 }
  0x5c   : > { %v267_v44 = vadd.f32 %v266_v42, %v265_v40  ;;  %v274_v45 = vadd.f32 %v273_v43, %v272_v41  ;;  %v311_v50 = vld.sshfl [vmem:[#allocation1] sm:$0xff pattern:$0x75316420]  ;;  %v312_v51 = vld.sshfl [vmem:[#allocation1 + $0x8] sm:$0xff pattern:$0x75316420] }
  0x5d   : > { %v315_v52 = vsel %vm234_vm2, %v311_v50, 0.0  ;;  %v322_v53 = vsel %vm234_vm2, %v312_v51, 0.0  ;;  %v369_v41 = vld [vmem:[#allocation5] sm:$0x1] }
  0x5e   : > { %v268_v46 = vrot.slane %v267_v44, 1  ;;  %v275_v47 = vrot.slane %v274_v45, 1  ;;  %v316_v54 = vrot.slane %v315_v52, 4  ;;  %v323_v55 = vrot.slane %v322_v53, 4 }
  0x60   : > { %v269_v48 = vadd.f32 %v268_v46, %v267_v44  ;;  %v276_v49 = vadd.f32 %v275_v47, %v274_v45  ;;  %v317_v56 = vadd.f32 %v316_v54, %v315_v52  ;;  %v324_v57 = vadd.f32 %v323_v55, %v322_v53 }
  0x62   : > { %631 = vrcp.f32 %v269_v48  ;;  %v318_v58 = vrot.slane %v317_v56, 2  ;;  %v325_v59 = vrot.slane %v324_v57, 2 }
  0x63   : > { %633 = vrcp.f32 %v276_v49 }
  0x64   : > { %635 = vlog2.f32 %v269_v48  ;;  %v319_v62 = vadd.f32 %v318_v58, %v317_v56  ;;  %v326_v63 = vadd.f32 %v325_v59, %v324_v57 }
  0x65   : > { %637 = vlog2.f32 %v276_v49 }
  0x66   : > { %v320_v4 = vrot.slane %v319_v62, 1  ;;  %v327_v5 = vrot.slane %v326_v63, 1 }
  0x68   : > { %v632_v60 = vpop.eup %631  ;;  %v321_v10 = vadd.f32 %v320_v4, %v319_v62  ;;  %v328_v11 = vadd.f32 %v327_v5, %v326_v63  ;;  %v783_v63 = vmov (%p215_p0), 4.0  }
  0x69   : > { %v634_v61 = vpop.eup %633 }
  0x6a   : > { %v636_v0 = vpop.eup %635  ;;  %v281_v1 = vrot.slane %v634_v61, 4 }
  0x6b   : > { %v638_v2 = vpop.eup %637  ;;  %v298_v3 = vmul.f32 0.6931472, %v636_v0  ;;  %v784_v0 = vmov (%p215_p0), 512.0  }
  0x6c   : > { %v282_v6 = vsel %vm234_vm2, %v632_v60, %v281_v1  ;;  %v300_v7 = vmul.f32 0.6931472, %v638_v2 }
  0x6d   : > { %v284_v8 = vmul.f32 %v630_v30, %v282_v6  ;;  %v301_v9 = vadd.f32 %v298_v3, %v890_v16 }
  0x6e   : > { %v302_v12 = vadd.f32 %v300_v7, %v892_v17  ;;  %v347_v17 = vsel %vm234_vm2, %v901_v31, 0.0  ;;  %v354_v31 = vld [vmem:[#allocation4] sm:$0xf] }
  0x6f   : > { %v285_v13 = vmul.f32 1.442695, %v284_v8  ;;  %v329_v14 = vsub.f32 %v301_v9, %v321_v10  ;;  %v349_v29 = vadd.f32 %v348_v25, %v347_v17 }
  0x70   : > { %v330_v15 = vsub.f32 %v302_v12, %v328_v11 }
  0x71   : > { %639 = vpow2.f32 %v285_v13 }
  0x72   : > { %v370_v18 = vadd.f32 %v330_v15, %v329_v14 }
  0x77   : > { %v640_v19 = vpop.eup %639 }
  0x78   : > { %333 = vst [vmem:[#allocation1] ss:$2 sm:$0xff] %v640_v19  ;;  %v355_v20 = vmul.f32 %v640_v19, %v306_v32 }
  0x7f   : > { %v334_v21 = vld.sshfl [vmem:[#allocation1] sm:$0xff pattern:$0x75316420]  ;;  %v335_v22 = vld.sshfl [vmem:[#allocation1 + $0x8] sm:$0xff pattern:$0x75316420] }
  0x80   : > { %357 = vst [vmem:[#allocation1] ss:$2 sm:$0xff] %v355_v20  ;;  %v338_v23 = vsel %vm234_vm2, %v334_v21, 0.0  ;;  %v339_v24 = vsel %vm234_vm2, %v335_v22, 0.0 }
  0x81   : > { %v340_v16 = vadd.f32 %v339_v24, %v338_v23 }
  0x83   : > { %341 = vadd.xlane.f32.xlu0 %v340_v16 }
  0x87   : > { %v358_v26 = vld.sshfl [vmem:[#allocation1] sm:$0xff pattern:$0x75316420]  ;;  %v359_v27 = vld.sshfl [vmem:[#allocation1 + $0x8] sm:$0xff pattern:$0x75316420] }
  0x88   : > { %v362_v30 = vsel %vm234_vm2, %v358_v26, 0.0  ;;  %v363_v32 = vsel %vm234_vm2, %v359_v27, 0.0 }
  0x89   : > { %v364_v33 = vadd.f32 %v363_v32, %v362_v30 }
  0x8b   : > { %365 = vadd.xlane.f32.xlu1 %v364_v33  ;;  %350 = vadd.xlane.f32.xlu0 %v349_v29 }
  0x93   : > { %371 = vadd.xlane.f32.xlu1 %v370_v18 }
  0xf6   : > { %v342_v35 = vpop.xlane.xlu0 %341 }
  0xf7   : > { %v343_v36 = vadd.f32 %v342_v35, %v331_v34 }
  0xf9   : > { %345 = vst.msk [vmem:[#allocation2] sm:$0xf] %vm344_vm5, %v343_v36 }
  0xfe   : > { %v366_v28 = vpop.xlane.xlu1 %365  ;;  %v351_v38 = vpop.xlane.xlu0 %350 }
  0xff   : > { %v367_v39 = vadd.f32 %v366_v28, %v354_v31  ;;  %v352_v40 = vadd.f32 %v351_v38, %v346_v37 }
 0x100   : > { %v380_v44 = vld [vmem:[#allocation2] sm:$0xf] (%p215_p0) }
 0x101   : > { %368 = vst.msk [vmem:[#allocation4] sm:$0xf] %vm344_vm5, %v367_v39 }
 0x102   : > { %353 = vst.msk [vmem:[#allocation3] sm:$0xf] %vm344_vm5, %v352_v40 }
 0x105   : > { %377 = sbr.rel (!%p215_p0) target bundleno = 478 (0x1de), region = 44 }
 0x106   : > { %v372_v42 = vpop.xlane.xlu1 %371 }
 0x107   : > { %v373_v43 = vadd.f32 %v372_v42, %v369_v41 }
 0x108   : > { %v378_v53 = vld [vmem:[#allocation4] sm:$0xf] (%p215_p0) }
 0x109   : > { %375 = vst.msk [vmem:[#allocation5] sm:$0x1] %vm374_vm6, %v373_v43  ;;  %v381_v45 = vld [vmem:[#allocation3] sm:$0xf] (%p215_p0)  ;;  %v379_v56 = vmul.f32 (%p215_p0), 2.0, %v378_v53 }
 0x10a   : > { %v382_v46 = vadd.f32 %v381_v45, %v380_v44 }
 0x10c   : > { %v383_v47 = vadd.f32 0.0001, %v382_v46 }
 0x10e   : > { %641 = vrcp.f32 %v383_v47  ;;  %v395_v50 = vand.u32 2147483648, %v383_v47  ;;  %vm389_vm7 = vweird.f32 %v383_v47  ;;  %v393_v52 = vand.u32 2147483647, %v383_v47 }
 0x10f   : > { %643 = vrcp.f32 %v783_v63 }
 0x110   : > { %v396_v55 = vor.u32 1.1754944e-38, %v395_v50  ;;  %vm394_vm10 = vcmp.eq.f32.partialorder %v393_v52, 8.507059e+37  ;;  %645 = vrcp.f32 %v784_v0  ;;  %v419_v21 = vld [vmem:[#allocation5] sm:$0x1] }
 0x114   : > { %v642_v48 = vpop.eup %641 }
 0x115   : > { %v385_v49 = vmul.f32 %v642_v48, %v383_v47  ;;  %vm390_vm8 = vweird.f32 %v642_v48  ;;  %v644_v1 = vpop.eup %643 }
 0x116   : > { %vm391_vm9 = vmor %vm389_vm7, %vm390_vm8  ;;  %v646_v2 = vpop.eup %645  ;;  %v411_v3 = vmul.f32 4.0, %v644_v1  ;;  %vm415_vm11 = vweird.f32 %v644_v1 }
 0x117   : > { %v386_v51 = vsub.f32 1.0, %v385_v49  ;;  %v422_v4 = vmul.f32 512.0, %v646_v2  ;;  %vm426_vm12 = vweird.f32 %v646_v2 }
 0x118   : > { %v412_v5 = vsub.f32 1.0, %v411_v3 }
 0x119   : > { %v387_v54 = vmul.f32 %v642_v48, %v386_v51  ;;  %v423_v8 = vsub.f32 1.0, %v422_v4 }
 0x11a   : > { %v413_v10 = vmul.f32 %v644_v1, %v412_v5 }
 0x11b   : > { %v388_v57 = vadd.f32 %v642_v48, %v387_v54  ;;  %v424_v12 = vmul.f32 %v646_v2, %v423_v8 }
 0x11c   : > { %v414_v14 = vadd.f32 %v644_v1, %v413_v10 }
 0x11d   : > { %v392_v58 = vsel %vm391_vm9, %v642_v48, %v388_v57  ;;  %v425_v18 = vadd.f32 %v646_v2, %v424_v12 }
 0x11e   : > { %v397_v59 = vsel %vm394_vm10, %v396_v55, %v392_v58  ;;  %v416_v20 = vsel %vm415_vm11, %v644_v1, %v414_v14 }
 0x11f   : > { %v398_v60 = vmul.f32 %v397_v59, %v379_v56  ;;  %v427_v22 = vsel %vm426_vm12, %v646_v2, %v425_v18 }
 0x121   : > { %v399_v61 = vsub.f32 1.0, %v398_v60 }
 0x123   : > { %v400_v62 = vsel %vm344_vm5, %v399_v61, 0.0 }
 0x124   : > { %401 = vadd.xlane.f32.xlu0 %v400_v62 }
 0x197   : > { %v402_v6 = vpop.xlane.xlu0 %401 }
 0x198   : > { %v403_v7 = vrot.slane %v402_v6, 4 }
 0x19a   : > { %v404_v9 = vadd.f32 %v403_v7, %v402_v6 }
 0x19c   : > { %v405_v11 = vrot.slane %v404_v9, 2 }
 0x19e   : > { %v406_v13 = vadd.f32 %v405_v11, %v404_v9 }
 0x1a0   : > { %v407_v15 = vrot.slane %v406_v13, 1 }
 0x1a2   : > { %v408_v19 = vadd.f32 %v407_v15, %v406_v13 }
 0x1a4   : > { %550 = vpush %v408_v19 }
 0x1a5   : > { %552 = vpush %v416_v20 }
 0x1a6   : > { %554 = vpush %v419_v21 }
 0x1a7   : > { %556 = vpush %v427_v22 }
 0x1d5   : > { %s551_s12 = spop %550 }
 0x1d6   : > { %s553_s20 = spop %552 }
 0x1d7   : > { %s418_s22 = smul.f32 %s553_s20, %s551_s12  ;;  %s555_s3 = spop %554 }
 0x1d8   : > { %s557_s4 = spop %556 }
 0x1d9   : > { %s429_s5 = smul.f32 %s557_s4, %s555_s3 }
 0x1db   : > { %s430_s6 = sadd.f32 %s429_s5, %s418_s22 }
 0x1dd   : > { %432 = sst [smem:[#allocation11]] %s430_s6 }
 0x1de PF: > { %p574_p1 = scmp.eq.s32.totalorder %s528_s15, 1  ;;  %s439_s9 = sshll.u32 %s951_s2, 4  ;;  %s440_s9 = int_to_ptr.hbm [resolvable:$true] %s439_s9 }
 0x1df   : > { %s785_s17 = smov [#allocation11]  }
 0x1e0   : > { %563 = dma.smem_to_hbm (%p574_p1), %s785_s17, 16, %s440_s9, [#allocation8]  }
 0x1e1   : > { %754 = dma.done.wait (%p574_p1), [#allocation8], 16  }
 0x1e2   : > { %756 = vsyncadd (%p574_p1), [#allocation8], 4294967280 }
 0x1e3   : > { %448 = sfence }
 0x1e4 PF: > { %s19_s14 = sadd.s32 1, %s779_s14   ;;  %s955_s9 = smov %s763_s10 }
 0x1e5   : > { %p16_p2 = scmp.ge.s32.totalorder %s19_s14, 4   ;;  %s956_s10 = smov %s767_s11 }
 0x1e6   : > { %s957_s11 = smov %s852_s21  ;;  %s958_s12 = smov %s775_s13 }
 0x1e7   : > { %s959_s13 = smov %s961_s16  ;;  %18 = sbr.rel (!%p16_p2) target bundleno = 7 (0x7), region = 87 }
 0x1ec   :  { %454 = vsyncpa [#allocation7], 1 }
 0x1ed   :  { %456 = vsyncpa [#allocation7 + $0x1], 1 }
 0x1ee   :  { %457 = vsyncpa [#allocation10], 1 }
 0x1ef   :  { %459 = vsyncpa [#allocation10 + $0x1], 1 }
 0x1f0   :  { %460 = vsyncpa [#allocation8], 1 }
 0x1f1   :  { %462 = vsyncpa [#allocation8 + $0x1], 1 }

</bundles_post_ra>
